<compile_context>
chip_gen: v7x
topology: tpu7x:2x2x1
jax: 0.10.0
libtpu: 0.0.40
codegen_flags: <defaults>
</compile_context>

<pallas_src>
import functools

import jax
import jax.numpy as jnp
from jax import lax
from jax.experimental import pallas as pl
from jax.experimental.pallas import tpu as pltpu


def mha_kernel(xq_ref, xkv_ref, wq_ref, wk_ref, wv_ref, wo_ref, o_ref,
               k_cache, v_cache, ctx_ref, *, num_heads, head_dim):
    # Blocks:
    #   xq_ref : (1, tq, H)   query-tile slice of x
    #   xkv_ref: (1, T,  H)   full sequence for K/V (constant index within a batch)
    #   wq/wk/wv/wo_ref: (H, H) VMEM-resident weights (scale folded into wq)
    #   o_ref  : (1, tq, H)
    # Scratch:
    #   k_cache/v_cache: (T, H) per-batch K/V cache (head-contiguous columns)
    #   ctx_ref        : (tq, H) per-head context staging for the fused out-proj
    qi = pl.program_id(1)

    # --- K/V projection once per batch element, at full MXU width (N = H). ---
    @pl.when(qi == 0)
    def _project_kv():
        xkv = xkv_ref[0]                                                 # (T, H)
        k_cache[...] = jnp.dot(
            xkv, wk_ref[...], preferred_element_type=jnp.float32
        ).astype(k_cache.dtype)
        v_cache[...] = jnp.dot(
            xkv, wv_ref[...], preferred_element_type=jnp.float32
        ).astype(v_cache.dtype)

    # --- Q projection for this query tile (softmax scale folded into wq). ---
    xq = xq_ref[0]                                                       # (tq, H)
    q_all = jnp.dot(
        xq, wq_ref[...], preferred_element_type=jnp.float32
    ).astype(xq.dtype)                                                   # (tq, H)
    k_all = k_cache[...]
    v_all = v_cache[...]

    # --- Per-head attention (num_heads is static, loop unrolls). ---
    for h in range(num_heads):
        lo = h * head_dim
        q_h = q_all[:, lo:lo + head_dim]                                 # (tq, d)
        k_h = k_all[:, lo:lo + head_dim]                                 # (T,  d)
        v_h = v_all[:, lo:lo + head_dim]                                 # (T,  d)

        # Scores: contract head_dim directly (no transpose), f32 accumulate.
        s = lax.dot_general(q_h, k_h, (((1,), (1,)), ((), ())),
                            preferred_element_type=jnp.float32)          # (tq, T)

        # TODO(synk): optional boolean `mask` (masked_fill -inf) not wired in;
        # this forward matches the mask=None path.  att_dropout is identity (eval).
        m = jnp.max(s, axis=-1, keepdims=True)
        p = jnp.exp(s - m)
        l = jnp.sum(p, axis=-1, keepdims=True)

        # Deferred normalization: PV matmul on unnormalized p, then scale the
        # small (tq, d) result with an EUP reciprocal instead of a full VPU
        # read-modify-write pass over the (tq, T) score tile.
        ctx_h = jnp.dot(p.astype(v_h.dtype), v_h,
                        preferred_element_type=jnp.float32)              # (tq, d)
        ctx_h = ctx_h * pl.reciprocal(l, approx=True)
        ctx_ref[:, lo:lo + head_dim] = ctx_h.astype(ctx_ref.dtype)

    # --- Fused output projection: single wide (K = H) MXU matmul. ---
    o_ref[0] = jnp.dot(ctx_ref[...], wo_ref[...],
                       preferred_element_type=jnp.float32).astype(o_ref.dtype)


def _vmem_budget_bytes():
    """Generation-aware VMEM budget (v7x: 64 MiB physical; v5e/v6e: 128 MiB)."""
    cap = None
    try:
        cap = getattr(pltpu.get_tpu_info(), "vmem_capacity_bytes", None)
    except Exception:
        cap = None
    if not cap:
        cap = 64 * 1024 * 1024  # conservative fallback (v7x physical)
    # ~48 MiB on v7x, ~96 MiB on v5e/v6e -- leave headroom for compiler scratch.
    return min(int(cap) * 3 // 4, 112 * 1024 * 1024)


def _pick_q_tile(T, H, itemsize, budget):
    """Largest query tile whose per-step VMEM footprint fits the budget."""
    if T <= 512:
        return T
    # Resident per batch element (double-buffered blocks counted at 2x):
    #   K/V caches (2*T*H) + full-seq x block (2*T*H) + weights (2*4*H*H).
    fixed = (4 * T * H + 8 * H * H) * itemsize
    avail = max(budget - fixed, 0)
    for cand in (512, 256, 128):
        if T % cand != 0:
            continue
        # f32 score tile + ctx scratch + double-buffered xq/out blocks.
        per_tile = cand * T * 4 + cand * H * itemsize + 4 * cand * H * itemsize
        if per_tile <= avail:
            return cand
    # TODO(synk): pad T / flash-style KV tiling for long sequences not divisible
    # by 128 -- an untiled query axis materializes a (T, T) f32 score tile.
    return T


def multi_head_attention(x, wq, wk, wv, wo, *, num_heads):
    """x: [B, T, H]; weights in PyTorch Linear layout (out_features, in_features)."""
    B, T, H = x.shape
    head_dim = H // num_heads
    scale = float(head_dim) ** (-0.5)
    dt = x.dtype
    itemsize = jnp.dtype(dt).itemsize

    # Host-side glue: (out, in) -> (in, out); fold the softmax scale into wq.
    # Output columns of wq/wk/wv are already head-contiguous ([h*d:(h+1)*d] = head h).
    wq_io = jnp.asarray(wq, dt).T * jnp.asarray(scale, dt)
    wk_io = jnp.asarray(wk, dt).T
    wv_io = jnp.asarray(wv, dt).T
    wo_io = jnp.asarray(wo, dt).T

    budget = _vmem_budget_bytes()
    tq = _pick_q_tile(T, H, itemsize, budget)
    n_qt = T // tq
    grid = (B, n_qt)

    kernel = functools.partial(mha_kernel, num_heads=num_heads, head_dim=head_dim)

    return pl.pallas_call(
        kernel,
        out_shape=jax.ShapeDtypeStruct((B, T, H), dt),
        grid_spec=pltpu.PrefetchScalarGridSpec(
            num_scalar_prefetch=0,
            grid=grid,
            in_specs=[
                pl.BlockSpec((1, tq, H), lambda b, q: (b, q, 0)),  # x (queries)
                pl.BlockSpec((1, T, H), lambda b, q: (b, 0, 0)),   # x (K/V, full seq)
                pl.BlockSpec((H, H), lambda b, q: (0, 0)),         # wq (scaled), resident
                pl.BlockSpec((H, H), lambda b, q: (0, 0)),         # wk, resident
                pl.BlockSpec((H, H), lambda b, q: (0, 0)),         # wv, resident
                pl.BlockSpec((H, H), lambda b, q: (0, 0)),         # wo, resident
            ],
            out_specs=pl.BlockSpec((1, tq, H), lambda b, q: (b, q, 0)),
            scratch_shapes=[
                pltpu.VMEM((T, H), dt),    # K cache (per batch element)
                pltpu.VMEM((T, H), dt),    # V cache
                pltpu.VMEM((tq, H), dt),   # per-head context staging (fused out-proj)
            ],
        ),
        compiler_params=pltpu.CompilerParams(
            # batch is megacore-parallel; the query axis must stay sequential
            # because the K/V cache is filled at qi == 0.
            dimension_semantics=("parallel", "arbitrary"),
            vmem_limit_bytes=budget,
        ),
    )(x, x, wq_io, wk_io, wv_io, wo_io)


def xavier_uniform(key, shape):
    # nn.init.xavier_uniform_ for a (out, in) weight: bound = sqrt(6/(in+out))
    fan_out, fan_in = shape
    bound = (6.0 / (fan_in + fan_out)) ** 0.5
    return jax.random.uniform(key, shape, dtype=jnp.float32,
                              minval=-bound, maxval=bound)


def reference_mha(x, wq, wk, wv, wo, *, num_heads):
    """Pure-JAX reference mirroring the PyTorch forward (mask=None, eval)."""
    B, T, H = x.shape
    d = H // num_heads
    scale = float(d) ** (-0.5)

    def proj(w):
        y = jnp.einsum('bth,oh->bto', x, w)          # Linear: x @ W^T
        return y.reshape(B, T, num_heads, d).transpose(0, 2, 1, 3)

    q, k, v = proj(wq), proj(wk), proj(wv)
    scores = jnp.einsum('bntd,bnsd->bnts', q, k) * scale
    attn = jax.nn.softmax(scores, axis=-1)
    out = jnp.einsum('bnts,bnsd->bntd', attn, v)
    out = out.transpose(0, 2, 1, 3).reshape(B, T, H)
    return jnp.einsum('bth,oh->bto', out, wo)


if __name__ == "__main__":
    B, T, hidden, num_heads = 2, 8, 32, 4
    dropout_rate = 0.1  # unused at inference (eval mode)

    key = jax.random.PRNGKey(0)
    kx, kq, kk, kv, ko = jax.random.split(key, 5)

    x = jax.random.normal(kx, (B, T, hidden), dtype=jnp.float32)
    wq = xavier_uniform(kq, (hidden, hidden))
    wk = xavier_uniform(kk, (hidden, hidden))
    wv = xavier_uniform(kv, (hidden, hidden))
    wo = xavier_uniform(ko, (hidden, hidden))

    out = multi_head_attention(x, wq, wk, wv, wo, num_heads=num_heads)
    out = jax.block_until_ready(out)

    ref = reference_mha(x, wq, wk, wv, wo, num_heads=num_heads)
    assert out.shape == (B, T, hidden)
    # Tolerance accounts for the approximate (EUP) reciprocal in the softmax.
    assert jnp.allclose(out, ref, atol=2e-3, rtol=2e-3), "mismatch vs reference"

    print("KERNEL_OK")
</pallas_src>

<mosaic_0001>
module attributes {stable_mosaic.version = 11 : i64} {
  func.func @mha_kernel(%arg0: i32, %arg1: i32, %arg2: memref<1x8x32xf32, #tpu.memory_space<vmem>>, %arg3: memref<1x8x32xf32, #tpu.memory_space<vmem>>, %arg4: memref<32x32xf32, #tpu.memory_space<vmem>>, %arg5: memref<32x32xf32, #tpu.memory_space<vmem>>, %arg6: memref<32x32xf32, #tpu.memory_space<vmem>>, %arg7: memref<32x32xf32, #tpu.memory_space<vmem>>, %arg8: memref<1x8x32xf32, #tpu.memory_space<vmem>>, %arg9: memref<8x32xf32, #tpu.memory_space<vmem>>, %arg10: memref<8x32xf32, #tpu.memory_space<vmem>>, %arg11: memref<8x32xf32, #tpu.memory_space<vmem>>) attributes {dimension_semantics = [#tpu.dimension_semantics<parallel>, #tpu.dimension_semantics<arbitrary>], iteration_bounds = array<i64: 2, 1>, scalar_prefetch = 0 : i64, scratch_operands = 3 : i64, tpu.core_type = #tpu.core_type<tc>, window_params = [{transform_indices = @transform_0, window_bounds = array<i64: 1, 8, 32>}, {transform_indices = @transform_1, window_bounds = array<i64: 1, 8, 32>}, {pipeline_mode = #tpu.pipeline_mode<synchronous>, transform_indices = @transform_2, window_bounds = array<i64: 32, 32>}, {pipeline_mode = #tpu.pipeline_mode<synchronous>, transform_indices = @transform_3, window_bounds = array<i64: 32, 32>}, {pipeline_mode = #tpu.pipeline_mode<synchronous>, transform_indices = @transform_4, window_bounds = array<i64: 32, 32>}, {pipeline_mode = #tpu.pipeline_mode<synchronous>, transform_indices = @transform_5, window_bounds = array<i64: 32, 32>}, {transform_indices = @transform_6, window_bounds = array<i64: 1, 8, 32>}]} {
    %c0_i32 = arith.constant 0 : i32
    %0 = arith.cmpi eq, %arg1, %c0_i32 : i32
    %1 = arith.extui %0 : i1 to i32
    %c0_i32_0 = arith.constant 0 : i32
    %2 = arith.cmpi ne, %1, %c0_i32_0 : i32
    scf.if %2 {
      %c0_38 = arith.constant 0 : index
      %c0_39 = arith.constant 0 : index
      %c0_40 = arith.constant 0 : index
      %79 = vector.load %arg3[%c0_38, %c0_39, %c0_40] : memref<1x8x32xf32, #tpu.memory_space<vmem>>, vector<1x8x32xf32>
      %80 = vector.shape_cast %79 : vector<1x8x32xf32> to vector<8x32xf32>
      %c0_41 = arith.constant 0 : index
      %c0_42 = arith.constant 0 : index
      %81 = vector.load %arg5[%c0_41, %c0_42] : memref<32x32xf32, #tpu.memory_space<vmem>>, vector<32x32xf32>
      %cst_43 = arith.constant dense<0.000000e+00> : vector<8x32xf32>
      %82 = tpu.matmul %80, %81, %cst_43 {dimension_numbers = #tpu.dot_dimension_numbers<[1], [0], [0], [1], [0, 0, 1, 1], [], []>} : vector<8x32xf32>, vector<32x32xf32>, vector<8x32xf32> -> vector<8x32xf32>
      %c0_44 = arith.constant 0 : index
      %c0_45 = arith.constant 0 : index
      %83 = vector.load %arg9[%c0_44, %c0_45] : memref<8x32xf32, #tpu.memory_space<vmem>>, vector<8x32xf32>
      tpu.vector_store %arg9[%c0_44, %c0_45], %82 {strides = array<i32>} : memref<8x32xf32, #tpu.memory_space<vmem>>, vector<8x32xf32>,
      %c0_46 = arith.constant 0 : index
      %c0_47 = arith.constant 0 : index
      %84 = vector.load %arg6[%c0_46, %c0_47] : memref<32x32xf32, #tpu.memory_space<vmem>>, vector<32x32xf32>
      %cst_48 = arith.constant dense<0.000000e+00> : vector<8x32xf32>
      %85 = tpu.matmul %80, %84, %cst_48 {dimension_numbers = #tpu.dot_dimension_numbers<[1], [0], [0], [1], [0, 0, 1, 1], [], []>} : vector<8x32xf32>, vector<32x32xf32>, vector<8x32xf32> -> vector<8x32xf32>
      %c0_49 = arith.constant 0 : index
      %c0_50 = arith.constant 0 : index
      %86 = vector.load %arg10[%c0_49, %c0_50] : memref<8x32xf32, #tpu.memory_space<vmem>>, vector<8x32xf32>
      tpu.vector_store %arg10[%c0_49, %c0_50], %85 {strides = array<i32>} : memref<8x32xf32, #tpu.memory_space<vmem>>, vector<8x32xf32>,
    } else {
    }
    %c0 = arith.constant 0 : index
    %c0_1 = arith.constant 0 : index
    %c0_2 = arith.constant 0 : index
    %3 = vector.load %arg2[%c0, %c0_1, %c0_2] : memref<1x8x32xf32, #tpu.memory_space<vmem>>, vector<1x8x32xf32>
    %4 = vector.shape_cast %3 : vector<1x8x32xf32> to vector<8x32xf32>
    %c0_3 = arith.constant 0 : index
    %c0_4 = arith.constant 0 : index
    %5 = vector.load %arg4[%c0_3, %c0_4] : memref<32x32xf32, #tpu.memory_space<vmem>>, vector<32x32xf32>
    %cst = arith.constant dense<0.000000e+00> : vector<8x32xf32>
    %6 = tpu.matmul %4, %5, %cst {dimension_numbers = #tpu.dot_dimension_numbers<[1], [0], [0], [1], [0, 0, 1, 1], [], []>} : vector<8x32xf32>, vector<32x32xf32>, vector<8x32xf32> -> vector<8x32xf32>
    %c0_5 = arith.constant 0 : index
    %c0_6 = arith.constant 0 : index
    %7 = vector.load %arg9[%c0_5, %c0_6] : memref<8x32xf32, #tpu.memory_space<vmem>>, vector<8x32xf32>
    %c0_7 = arith.constant 0 : index
    %c0_8 = arith.constant 0 : index
    %8 = vector.load %arg10[%c0_7, %c0_8] : memref<8x32xf32, #tpu.memory_space<vmem>>, vector<8x32xf32>
    %9 = vector.extract_strided_slice %6 {offsets = [0, 0], sizes = [8, 8], strides = [1, 1]} : vector<8x32xf32> to vector<8x8xf32>
    %10 = vector.extract_strided_slice %7 {offsets = [0, 0], sizes = [8, 8], strides = [1, 1]} : vector<8x32xf32> to vector<8x8xf32>
    %11 = vector.extract_strided_slice %8 {offsets = [0, 0], sizes = [8, 8], strides = [1, 1]} : vector<8x32xf32> to vector<8x8xf32>
    %cst_9 = arith.constant dense<0.000000e+00> : vector<8x8xf32>
    %12 = tpu.matmul %9, %10, %cst_9 {dimension_numbers = #tpu.dot_dimension_numbers<[1], [1], [0], [0], [0, 0, 1, 0], [], []>} : vector<8x8xf32>, vector<8x8xf32>, vector<8x8xf32> -> vector<8x8xf32>
    %cst_10 = arith.constant dense<0xFF800000> : vector<8xf32>
    %13 = vector.multi_reduction <maximumf>, %12, %cst_10 [1] : vector<8x8xf32> to vector<8xf32>
    %14 = vector.shape_cast %13 : vector<8xf32> to vector<8x1xf32>
    %15 = vector.broadcast %14 : vector<8x1xf32> to vector<8x8xf32>
    %16 = arith.subf %12, %15 : vector<8x8xf32>
    %17 = math.exp %16 : vector<8x8xf32>
    %cst_11 = arith.constant dense<0.000000e+00> : vector<8xf32>
    %18 = vector.multi_reduction <add>, %17, %cst_11 [1] : vector<8x8xf32> to vector<8xf32>
    %19 = vector.shape_cast %18 : vector<8xf32> to vector<8x1xf32>
    %cst_12 = arith.constant dense<0.000000e+00> : vector<8x8xf32>
    %20 = tpu.matmul %17, %11, %cst_12 {dimension_numbers = #tpu.dot_dimension_numbers<[1], [0], [0], [1], [0, 0, 1, 1], [], []>} : vector<8x8xf32>, vector<8x8xf32>, vector<8x8xf32> -> vector<8x8xf32>
    %21 = tpu.reciprocal %19 {approx = true} : vector<8x1xf32> -> vector<8x1xf32>
    %22 = vector.broadcast %21 : vector<8x1xf32> to vector<8x8xf32>
    %23 = arith.mulf %20, %22 : vector<8x8xf32>
    %c0_13 = arith.constant 0 : index
    %c0_14 = arith.constant 0 : index
    %24 = vector.load %arg11[%c0_13, %c0_14] : memref<8x32xf32, #tpu.memory_space<vmem>>, vector<8x8xf32>
    tpu.vector_store %arg11[%c0_13, %c0_14], %23 {strides = array<i32>} : memref<8x32xf32, #tpu.memory_space<vmem>>, vector<8x8xf32>,
    %25 = vector.extract_strided_slice %6 {offsets = [0, 8], sizes = [8, 8], strides = [1, 1]} : vector<8x32xf32> to vector<8x8xf32>
    %26 = vector.extract_strided_slice %7 {offsets = [0, 8], sizes = [8, 8], strides = [1, 1]} : vector<8x32xf32> to vector<8x8xf32>
    %27 = vector.extract_strided_slice %8 {offsets = [0, 8], sizes = [8, 8], strides = [1, 1]} : vector<8x32xf32> to vector<8x8xf32>
    %cst_15 = arith.constant dense<0.000000e+00> : vector<8x8xf32>
    %28 = tpu.matmul %25, %26, %cst_15 {dimension_numbers = #tpu.dot_dimension_numbers<[1], [1], [0], [0], [0, 0, 1, 0], [], []>} : vector<8x8xf32>, vector<8x8xf32>, vector<8x8xf32> -> vector<8x8xf32>
    %cst_16 = arith.constant dense<0xFF800000> : vector<8xf32>
    %29 = vector.multi_reduction <maximumf>, %28, %cst_16 [1] : vector<8x8xf32> to vector<8xf32>
    %30 = vector.shape_cast %29 : vector<8xf32> to vector<8x1xf32>
    %31 = vector.broadcast %30 : vector<8x1xf32> to vector<8x8xf32>
    %32 = arith.subf %28, %31 : vector<8x8xf32>
    %33 = math.exp %32 : vector<8x8xf32>
    %cst_17 = arith.constant dense<0.000000e+00> : vector<8xf32>
    %34 = vector.multi_reduction <add>, %33, %cst_17 [1] : vector<8x8xf32> to vector<8xf32>
    %35 = vector.shape_cast %34 : vector<8xf32> to vector<8x1xf32>
    %cst_18 = arith.constant dense<0.000000e+00> : vector<8x8xf32>
    %36 = tpu.matmul %33, %27, %cst_18 {dimension_numbers = #tpu.dot_dimension_numbers<[1], [0], [0], [1], [0, 0, 1, 1], [], []>} : vector<8x8xf32>, vector<8x8xf32>, vector<8x8xf32> -> vector<8x8xf32>
    %37 = tpu.reciprocal %35 {approx = true} : vector<8x1xf32> -> vector<8x1xf32>
    %38 = vector.broadcast %37 : vector<8x1xf32> to vector<8x8xf32>
    %39 = arith.mulf %36, %38 : vector<8x8xf32>
    %c0_19 = arith.constant 0 : index
    %c8 = arith.constant 8 : index
    %40 = vector.load %arg11[%c0_19, %c8] : memref<8x32xf32, #tpu.memory_space<vmem>>, vector<8x8xf32>
    tpu.vector_store %arg11[%c0_19, %c8], %39 {strides = array<i32>} : memref<8x32xf32, #tpu.memory_space<vmem>>, vector<8x8xf32>,
    %41 = vector.extract_strided_slice %6 {offsets = [0, 16], sizes = [8, 8], strides = [1, 1]} : vector<8x32xf32> to vector<8x8xf32>
    %42 = vector.extract_strided_slice %7 {offsets = [0, 16], sizes = [8, 8], strides = [1, 1]} : vector<8x32xf32> to vector<8x8xf32>
    %43 = vector.extract_strided_slice %8 {offsets = [0, 16], sizes = [8, 8], strides = [1, 1]} : vector<8x32xf32> to vector<8x8xf32>
    %cst_20 = arith.constant dense<0.000000e+00> : vector<8x8xf32>
    %44 = tpu.matmul %41, %42, %cst_20 {dimension_numbers = #tpu.dot_dimension_numbers<[1], [1], [0], [0], [0, 0, 1, 0], [], []>} : vector<8x8xf32>, vector<8x8xf32>, vector<8x8xf32> -> vector<8x8xf32>
    %cst_21 = arith.constant dense<0xFF800000> : vector<8xf32>
    %45 = vector.multi_reduction <maximumf>, %44, %cst_21 [1] : vector<8x8xf32> to vector<8xf32>
    %46 = vector.shape_cast %45 : vector<8xf32> to vector<8x1xf32>
    %47 = vector.broadcast %46 : vector<8x1xf32> to vector<8x8xf32>
    %48 = arith.subf %44, %47 : vector<8x8xf32>
    %49 = math.exp %48 : vector<8x8xf32>
    %cst_22 = arith.constant dense<0.000000e+00> : vector<8xf32>
    %50 = vector.multi_reduction <add>, %49, %cst_22 [1] : vector<8x8xf32> to vector<8xf32>
    %51 = vector.shape_cast %50 : vector<8xf32> to vector<8x1xf32>
    %cst_23 = arith.constant dense<0.000000e+00> : vector<8x8xf32>
    %52 = tpu.matmul %49, %43, %cst_23 {dimension_numbers = #tpu.dot_dimension_numbers<[1], [0], [0], [1], [0, 0, 1, 1], [], []>} : vector<8x8xf32>, vector<8x8xf32>, vector<8x8xf32> -> vector<8x8xf32>
    %53 = tpu.reciprocal %51 {approx = true} : vector<8x1xf32> -> vector<8x1xf32>
    %54 = vector.broadcast %53 : vector<8x1xf32> to vector<8x8xf32>
    %55 = arith.mulf %52, %54 : vector<8x8xf32>
    %c0_24 = arith.constant 0 : index
    %c16 = arith.constant 16 : index
    %56 = vector.load %arg11[%c0_24, %c16] : memref<8x32xf32, #tpu.memory_space<vmem>>, vector<8x8xf32>
    tpu.vector_store %arg11[%c0_24, %c16], %55 {strides = array<i32>} : memref<8x32xf32, #tpu.memory_space<vmem>>, vector<8x8xf32>,
    %57 = vector.extract_strided_slice %6 {offsets = [0, 24], sizes = [8, 8], strides = [1, 1]} : vector<8x32xf32> to vector<8x8xf32>
    %58 = vector.extract_strided_slice %7 {offsets = [0, 24], sizes = [8, 8], strides = [1, 1]} : vector<8x32xf32> to vector<8x8xf32>
    %59 = vector.extract_strided_slice %8 {offsets = [0, 24], sizes = [8, 8], strides = [1, 1]} : vector<8x32xf32> to vector<8x8xf32>
    %cst_25 = arith.constant dense<0.000000e+00> : vector<8x8xf32>
    %60 = tpu.matmul %57, %58, %cst_25 {dimension_numbers = #tpu.dot_dimension_numbers<[1], [1], [0], [0], [0, 0, 1, 0], [], []>} : vector<8x8xf32>, vector<8x8xf32>, vector<8x8xf32> -> vector<8x8xf32>
    %cst_26 = arith.constant dense<0xFF800000> : vector<8xf32>
    %61 = vector.multi_reduction <maximumf>, %60, %cst_26 [1] : vector<8x8xf32> to vector<8xf32>
    %62 = vector.shape_cast %61 : vector<8xf32> to vector<8x1xf32>
    %63 = vector.broadcast %62 : vector<8x1xf32> to vector<8x8xf32>
    %64 = arith.subf %60, %63 : vector<8x8xf32>
    %65 = math.exp %64 : vector<8x8xf32>
    %cst_27 = arith.constant dense<0.000000e+00> : vector<8xf32>
    %66 = vector.multi_reduction <add>, %65, %cst_27 [1] : vector<8x8xf32> to vector<8xf32>
    %67 = vector.shape_cast %66 : vector<8xf32> to vector<8x1xf32>
    %cst_28 = arith.constant dense<0.000000e+00> : vector<8x8xf32>
    %68 = tpu.matmul %65, %59, %cst_28 {dimension_numbers = #tpu.dot_dimension_numbers<[1], [0], [0], [1], [0, 0, 1, 1], [], []>} : vector<8x8xf32>, vector<8x8xf32>, vector<8x8xf32> -> vector<8x8xf32>
    %69 = tpu.reciprocal %67 {approx = true} : vector<8x1xf32> -> vector<8x1xf32>
    %70 = vector.broadcast %69 : vector<8x1xf32> to vector<8x8xf32>
    %71 = arith.mulf %68, %70 : vector<8x8xf32>
    %c0_29 = arith.constant 0 : index
    %c24 = arith.constant 24 : index
    %72 = vector.load %arg11[%c0_29, %c24] : memref<8x32xf32, #tpu.memory_space<vmem>>, vector<8x8xf32>
    tpu.vector_store %arg11[%c0_29, %c24], %71 {strides = array<i32>} : memref<8x32xf32, #tpu.memory_space<vmem>>, vector<8x8xf32>,
    %c0_30 = arith.constant 0 : index
    %c0_31 = arith.constant 0 : index
    %73 = vector.load %arg11[%c0_30, %c0_31] : memref<8x32xf32, #tpu.memory_space<vmem>>, vector<8x32xf32>
    %c0_32 = arith.constant 0 : index
    %c0_33 = arith.constant 0 : index
    %74 = vector.load %arg7[%c0_32, %c0_33] : memref<32x32xf32, #tpu.memory_space<vmem>>, vector<32x32xf32>
    %cst_34 = arith.constant dense<0.000000e+00> : vector<8x32xf32>
    %75 = tpu.matmul %73, %74, %cst_34 {dimension_numbers = #tpu.dot_dimension_numbers<[1], [0], [0], [1], [0, 0, 1, 1], [], []>} : vector<8x32xf32>, vector<32x32xf32>, vector<8x32xf32> -> vector<8x32xf32>
    %c0_35 = arith.constant 0 : index
    %c0_36 = arith.constant 0 : index
    %c0_37 = arith.constant 0 : index
    %76 = vector.load %arg8[%c0_35, %c0_36, %c0_37] : memref<1x8x32xf32, #tpu.memory_space<vmem>>, vector<1x8x32xf32>
    %77 = vector.shape_cast %76 : vector<1x8x32xf32> to vector<8x32xf32>
    %78 = vector.shape_cast %75 : vector<8x32xf32> to vector<1x8x32xf32>
    tpu.vector_store %arg8[%c0_35, %c0_36, %c0_37], %78 {strides = array<i32>} : memref<1x8x32xf32, #tpu.memory_space<vmem>>, vector<1x8x32xf32>,
    return
  }
  func.func @transform_0(%arg0: i32, %arg1: i32) -> (i32, i32, i32) {
    %c0_i32 = arith.constant 0 : i32
    %c0_i32_0 = arith.constant 0 : i32
    return %arg0, %arg1, %c0_i32 : i32, i32, i32
  }
  func.func @transform_1(%arg0: i32, %arg1: i32) -> (i32, i32, i32) {
    %c0_i32 = arith.constant 0 : i32
    %c0_i32_0 = arith.constant 0 : i32
    %c0_i32_1 = arith.constant 0 : i32
    return %arg0, %c0_i32, %c0_i32_0 : i32, i32, i32
  }
  func.func @transform_2(%arg0: i32, %arg1: i32) -> (i32, i32) {
    %c0_i32 = arith.constant 0 : i32
    %c0_i32_0 = arith.constant 0 : i32
    %c0_i32_1 = arith.constant 0 : i32
    return %c0_i32, %c0_i32_0 : i32, i32
  }
  func.func @transform_3(%arg0: i32, %arg1: i32) -> (i32, i32) {
    %c0_i32 = arith.constant 0 : i32
    %c0_i32_0 = arith.constant 0 : i32
    %c0_i32_1 = arith.constant 0 : i32
    return %c0_i32, %c0_i32_0 : i32, i32
  }
  func.func @transform_4(%arg0: i32, %arg1: i32) -> (i32, i32) {
    %c0_i32 = arith.constant 0 : i32
    %c0_i32_0 = arith.constant 0 : i32
    %c0_i32_1 = arith.constant 0 : i32
    return %c0_i32, %c0_i32_0 : i32, i32
  }
  func.func @transform_5(%arg0: i32, %arg1: i32) -> (i32, i32) {
    %c0_i32 = arith.constant 0 : i32
    %c0_i32_0 = arith.constant 0 : i32
    %c0_i32_1 = arith.constant 0 : i32
    return %c0_i32, %c0_i32_0 : i32, i32
  }
  func.func @transform_6(%arg0: i32, %arg1: i32) -> (i32, i32, i32) {
    %c0_i32 = arith.constant 0 : i32
    %c0_i32_0 = arith.constant 0 : i32
    return %arg0, %arg1, %c0_i32 : i32, i32, i32
  }
}

</mosaic_0001>

<bundles_post_ra>
// kernel: tpu_custom_call.1
= control target key start
LH: loop header
LB: loop body
LE: loop exit
PB: predicated region body
PF: predicated region fallthrough
CT: control target
= control target key end

     0   :  { %s2598_s0 = inlined_call_operand.hbm [shape: f32[2,8,32], index: 0, kind: input, shape index: {}]   ;;  %s2599_s1 = inlined_call_operand.hbm [shape: f32[2,8,32], index: 1, kind: input, shape index: {}]   ;;  %s2600_s2 = inlined_call_operand.hbm [shape: f32[32,32], index: 2, kind: input, shape index: {}]   ;;  %s2601_s3 = inlined_call_operand.hbm [shape: f32[32,32], index: 3, kind: input, shape index: {}]   ;;  %s2602_s4 = inlined_call_operand.hbm [shape: f32[32,32], index: 4, kind: input, shape index: {}]   ;;  %s2603_s5 = inlined_call_operand.hbm [shape: f32[32,32], index: 5, kind: input, shape index: {}]   ;;  %s2604_s6 = inlined_call_operand.hbm [shape: f32[2,8,32], index: 6, kind: output, shape index: {}]  }
   0x1   :  { %2610 = sst [smem:[#allocation24_spill]] %s2600_s2 }
   0x2   :  { %2611 = sst [smem:[#allocation25_spill]] %s2601_s3 }
   0x3   :  { %2612 = sst [smem:[#allocation26_spill]] %s2602_s4 }
   0x4   :  { %2613 = sst [smem:[#allocation27_spill]] %s2603_s5 }
   0x5   :  { %11 = vsyncpa [#allocation6], 0 }
   0x6   :  { %13 = vsyncpa [#allocation6 + $0x1], 0 }
   0x7   :  { %14 = vsyncpa [#allocation9], 0 }
   0x8   :  { %16 = vsyncpa [#allocation9 + $0x1], 0 }
   0x9   :  { %17 = vsyncpa [#allocation12], 0 }
   0xa   :  { %18 = vsyncpa [#allocation15], 0 }
   0xb   :  { %19 = vsyncpa [#allocation7], 0 }
   0xc   :  { %21 = vsyncpa [#allocation7 + $0x1], 0  ;;  %s2174_s21 = smov 0   ;;  %s2176_s22 = smov 0  }
   0xd   :  { %s2178_s23 = smov 0   ;;  %s2180_s24 = smov 0  }
   0xe   :  { %s2182_s25 = smov 0   ;;  %s2184_s26 = smov 0  }
   0xf LB: > { %s2205_s27 = sadd.s32 4294967295, %s2119_s26   ;;  %p1532_p0 = scmp.ge.s32.totalorder %s2119_s26, 1  ;;  %s2119_s26 = sphi %s2184_s26, %s27_s26   ;;  %s2115_s25 = sphi %s2182_s25, %s2644_s25   ;;  %s2111_s24 = sphi %s2180_s24, %s2643_s24   ;;  %s2107_s23 = sphi %s2178_s23, %s2642_s23   ;;  %s2103_s22 = sphi %s2176_s22, %s2641_s22   ;;  %s2099_s21 = sphi %s2174_s21, %s2640_s21  }
  0x10   : > { %p2605_p1 = scmp.eq.s32.totalorder %s2205_s27, 0  ;;  %p210_p2 = scmp.lt.s32.totalorder %s2119_s26, 3 }
  0x11   : > { %s2121_s29 = smov [#allocation10]   ;;  %s2122_s8 = smov [#allocation11]  }
  0x12   : > { %p2210_p3 = pnand %p1532_p0, %p210_p2  ;;  %s222_s30 = sshll.u32 %s2121_s29, 4  ;;  %s2214_s30 = int_to_ptr.vmem [resolvable:$true] %s222_s30 }
  0x13   : > { %s235_s9 = sshll.u32 %s2122_s8, 4  ;;  %s2123_s10 = smov [#allocation13]   ;;  %s2225_s9 = int_to_ptr.vmem [resolvable:$true] %s235_s9 }
  0x14   : > { %s2614_s28 = scalar_select %p2210_p3, 1, 0 }
  0x15   : > { %p1736_p4 = pneg %p2210_p3  ;;  %s2227_s11 = sshll.u32 %s2123_s10, 4  ;;  %s249_s11 = int_to_ptr.vmem [resolvable:$true] %s2227_s11 }
  0x16   : > { %s2616_s2 = sld [smem:[#allocation24_spill]] }
  0x17   : > { %p2221_p6 = pnand %p1736_p4, %p2605_p1 }
  0x19   : > { %p2237_p8 = pneg %p2221_p6 }
  0x1c   : > { %s1849_s14 = scalar_lea.hbm %s2616_s2, 512 }
  0x1d   : > { %p1850_p7 = scmp.ne.s32.totalorder %s2616_s2, %s1849_s14  ;;  %p1856_p11 = scmp.lt.u32.totalorder %s1849_s14, %s2616_s2 }
  0x1f   : > { %p1852_p9 = pnand %p2237_p8, %p1850_p7 }
  0x21   : > { %p1853_p10 = pneg %p1852_p9 }
  0x23   : > { %p1858_p12 = pnand %p1856_p11, %p1853_p10 }
  0x25   : > { %1861 = shalt.err (!%p1858_p12)
}
  0x26   : > { %s1862_s20 = scalar_lea.vmem %s2214_s30, 512  ;;  %p1870_p4 = scmp.lt.s32.totalorder %s2214_s30, %s2214_s30 }
  0x27   : > { %p1863_p13 = scmp.ne.s32.totalorder %s2214_s30, %s1862_s20  ;;  %p1871_p5 = scmp.lt.s32.totalorder %s1862_s20, %s1862_s20 }
  0x29   : > { %p1865_p0 = pnand %p1863_p13, %p2237_p8  ;;  %p1872_p7 = por %p1871_p5, %p1870_p4 }
  0x2b   : > { %p1866_p2 = pneg %p1865_p0 }
  0x2d   : > { %p1873_p9 = pnand %p1872_p7, %p1866_p2 }
  0x2f   : > { %1876 = shalt.err (!%p1873_p9)
}
  0x30   : > { %s2124_s29 = smov 128   ;;  %s2125_s8 = smov 8  }
  0x31   : > { %1739 = dma.hbm_to_vmem [thread:$0]  (!%p2221_p6), %s2616_s2, 512, %s2214_s30, [#allocation9], %s2124_s29, %s2124_s29, %s2125_s8  }
  0x32   : > { %s2618_s3 = sld [smem:[#allocation25_spill]] }
  0x38   : > { %s1877_s15 = scalar_lea.hbm %s2618_s3, 512 }
  0x39   : > { %p1878_p5 = scmp.ne.s32.totalorder %s2618_s3, %s1877_s15  ;;  %p1884_p12 = scmp.lt.u32.totalorder %s1877_s15, %s2618_s3 }
  0x3b   : > { %p1880_p10 = pnand %p1878_p5, %p2237_p8 }
  0x3d   : > { %p1881_p11 = pneg %p1880_p10 }
  0x3f   : > { %p1886_p13 = pnand %p1884_p12, %p1881_p11 }
  0x41   : > { %1889 = shalt.err (!%p1886_p13)
}
  0x42   : > { %s1890_s30 = scalar_lea.vmem %s2225_s9, 512  ;;  %p1898_p7 = scmp.lt.s32.totalorder %s2225_s9, %s2225_s9 }
  0x43   : > { %p1891_p0 = scmp.ne.s32.totalorder %s2225_s9, %s1890_s30  ;;  %p1899_p9 = scmp.lt.s32.totalorder %s1890_s30, %s1890_s30 }
  0x45   : > { %p1893_p2 = pnand %p1891_p0, %p2237_p8  ;;  %p1900_p5 = por %p1899_p9, %p1898_p7 }
  0x47   : > { %p1894_p4 = pneg %p1893_p2 }
  0x49   : > { %p1901_p10 = pnand %p1900_p5, %p1894_p4 }
  0x4b   : > { %1904 = shalt.err (!%p1901_p10)
}
  0x4c   : > { %1742 = dma.hbm_to_vmem [thread:$0]  (!%p2221_p6), %s2618_s3, 512, %s2225_s9, [#allocation12], %s2124_s29, %s2124_s29, %s2125_s8  }
  0x4d   : > { %s2619_s4 = sld [smem:[#allocation26_spill]] }
  0x53   : > { %s1905_s15 = scalar_lea.hbm %s2619_s4, 512 }
  0x54   : > { %p1906_p11 = scmp.ne.s32.totalorder %s2619_s4, %s1905_s15  ;;  %p1912_p0 = scmp.lt.u32.totalorder %s1905_s15, %s2619_s4 }
  0x56   : > { %p1908_p12 = pnand %p1906_p11, %p2237_p8 }
  0x58   : > { %p1909_p13 = pneg %p1908_p12 }
  0x5a   : > { %p1914_p2 = pnand %p1912_p0, %p1909_p13 }
  0x5c   : > { %1917 = shalt.err (!%p1914_p2)
}
  0x5d   : > { %s1918_s30 = scalar_lea.vmem %s249_s11, 512  ;;  %p1926_p5 = scmp.lt.s32.totalorder %s249_s11, %s249_s11 }
  0x5e   : > { %p1919_p4 = scmp.ne.s32.totalorder %s249_s11, %s1918_s30  ;;  %p1927_p10 = scmp.lt.s32.totalorder %s1918_s30, %s1918_s30 }
  0x60   : > { %p1921_p7 = pnand %p1919_p4, %p2237_p8  ;;  %p1928_p1 = por %p1927_p10, %p1926_p5 }
  0x62   : > { %p1922_p9 = pneg %p1921_p7 }
  0x64   : > { %p1929_p3 = pnand %p1928_p1, %p1922_p9 }
  0x66   : > { %1932 = shalt.err (!%p1929_p3)
}
  0x67   : > { %1745 = dma.hbm_to_vmem [thread:$0]  (!%p2221_p6), %s2619_s4, 512, %s249_s11, [#allocation12], %s2124_s29, %s2124_s29, %s2125_s8  }
  0x68   : > { %s2126_s12 = smov [#allocation14]   ;;  %s2620_s5 = sld [smem:[#allocation27_spill]] }
  0x69   : > { %s261_s13 = sshll.u32 %s2126_s12, 4  ;;  %s262_s13 = int_to_ptr.vmem [resolvable:$true] %s261_s13 }
  0x6e   : > { %s1933_s16 = scalar_lea.hbm %s2620_s5, 512 }
  0x6f   : > { %p1934_p1 = scmp.ne.s32.totalorder %s2620_s5, %s1933_s16  ;;  %p1940_p12 = scmp.lt.u32.totalorder %s1933_s16, %s2620_s5 }
  0x71   : > { %p1936_p3 = pnand %p1934_p1, %p2237_p8 }
  0x73   : > { %p1937_p11 = pneg %p1936_p3 }
  0x75   : > { %p1942_p13 = pnand %p1940_p12, %p1937_p11 }
  0x77   : > { %1945 = shalt.err (!%p1942_p13)
}
  0x78   : > { %s1946_s11 = scalar_lea.vmem %s262_s13, 512  ;;  %p1954_p7 = scmp.lt.s32.totalorder %s262_s13, %s262_s13 }
  0x79   : > { %p1947_p0 = scmp.ne.s32.totalorder %s262_s13, %s1946_s11  ;;  %p1955_p9 = scmp.lt.s32.totalorder %s1946_s11, %s1946_s11 }
  0x7b   : > { %p1949_p2 = pnand %p1947_p0, %p2237_p8  ;;  %p1956_p5 = por %p1955_p9, %p1954_p7 }
  0x7d   : > { %p1950_p4 = pneg %p1949_p2 }
  0x7f   : > { %p1957_p10 = pnand %p1956_p5, %p1950_p4 }
  0x81   : > { %1960 = shalt.err (!%p1957_p10)
}
  0x82   : > { %1748 = dma.hbm_to_vmem [thread:$0]  (!%p2221_p6), %s2620_s5, 512, %s262_s13, [#allocation15], %s2124_s29, %s2124_s29, %s2125_s8  }
  0x83   : > { %s1531_s7 = sadd.s32 4294967294, %s2119_s26   ;;  %s39_s17 = sadd.s32 1, %s2115_s25 }
  0x84   : > { %p41_p8 = scmp.ge.s32.totalorder %s39_s17, 2  ;;  %s48_s12 = sadd.s32 1, %s2107_s23 }
  0x85   : > { %p55_p1 = scmp.ne.s32.totalorder %s2107_s23, %s2103_s22  ;;  %p56_p3 = scmp.eq.s32.totalorder %s2119_s26, 0 }
  0x86   : > { %s2646_s17 = smov (%p41_p8, %s39_s17), 0  ;;  %p61_p12 = scmp.ne.s32.totalorder %s2103_s22, %s2099_s21 }
  0x87   : > { %2621 = sst [smem:[#allocation23_spill]] %s2646_s17  ;;  %p2338_p11 = por %p56_p3, %p55_p1 }
  0x88   : > { %s43_s29 = ssub.s32 %s2115_s25, %s2646_s17  ;;  %p197_p6 = scmp.eq.s32.totalorder %s2205_s27, 1 }
  0x89   : > { %p46_p13 = scmp.eq.s32.totalorder %s43_s29, 0  ;;  %p2623_p0 = scmp.eq.s32.totalorder %s2205_s27, 0 }
  0x8a   : > { %p2353_p4 = por %p197_p6, %p55_p1  ;;  %p203_p7 = scmp.eq.s32.totalorder %s1531_s7, 1 }
  0x8b   : > { %p2349_p2 = por %p2623_p0, %p61_p12  ;;  %p1764_p5 = scmp.lt.s32.totalorder %s2119_s26, 2 }
  0x8c   : > { %s2625_s13 = scalar_select %p2353_p4, 1, 0 }
  0x8d   : > { %s2624_s8 = scalar_select %p2349_p2, 1, 0 }
  0x8e   : > { %s2358_s15 = scalar_select %p46_p13, %s2107_s23, %s48_s12  }
  0x8f   : > { %p2360_p9 = por %p203_p7, %p61_p12  ;;  %s275_s18 = sand.u32 1, %s2107_s23  }
  0x90   : > { %s1539_s19 = sshll.u32 %s2115_s25, 7  ;;  %s2367_s20 = sshll.u32 %s275_s18, 3 }
  0x91   : > { %s2626_s16 = scalar_select %p2360_p9, 1, 0 }
  0x92   : > { %s2372_s9 = scalar_lea.hbm %s2598_s0, %s1539_s19  ;;  %s279_s10 = scalar_lea.vmem [#allocation5], %s2367_s20 }
  0x93   : > { %s287_s7 = sshll.u32 %s279_s10, 4  ;;  %p2377_p10 = pnand %p1764_p5, %p2338_p11  ;;  %s2381_s7 = int_to_ptr.vmem [resolvable:$true] %s287_s7 }
  0x94   : > { %s2386_s11 = scalar_lea.hbm %s2599_s1, %s1539_s19  ;;  %s276_s2 = scalar_lea.sflag [#allocation6], %s275_s18 }
  0x95   : > { %s1961_s3 = scalar_lea.hbm %s2372_s9, 128  ;;  %p1963_p1 = pneg %p2377_p10 }
  0x96   : > { %p1962_p8 = scmp.ne.s32.totalorder %s2372_s9, %s1961_s3  ;;  %s1966_s4 = scalar_lea.hbm %s2598_s0, 256 }
  0x97   : > { %p1967_p12 = scmp.lt.u32.totalorder %s2372_s9, %s2598_s0  ;;  %p1968_p6 = scmp.lt.u32.totalorder %s1966_s4, %s1961_s3 }
  0x98   : > { %p1964_p3 = pnand %p1963_p1, %p1962_p8  ;;  %p1970_p0 = scmp.lt.u32.totalorder %s1961_s3, %s2372_s9 }
  0x99   : > { %p1969_p13 = por %p1968_p6, %p1967_p12 }
  0x9a   : > { %p1965_p11 = pneg %p1964_p3 }
  0x9b   : > { %p1971_p7 = por %p1970_p0, %p1969_p13 }
  0x9d   : > { %p1972_p5 = pnand %p1971_p7, %p1965_p11 }
  0x9f   : > { %1975 = shalt.err (!%p1972_p5)
}
  0xa0   : > { %s1976_s18 = scalar_lea.vmem %s2381_s7, 128  ;;  %s2127_s19 = smov [#allocation5]  }
  0xa1   : > { %p1977_p8 = scmp.ne.s32.totalorder %s2381_s7, %s1976_s18  ;;  %s1981_s29 = sshll.u32 %s2127_s19, 4  ;;  %s1982_s29 = int_to_ptr.vmem [resolvable:$false] %s1981_s29 }
  0xa2   : > { %s1983_s5 = scalar_lea.vmem %s1982_s29, 256  ;;  %p1984_p4 = scmp.lt.s32.totalorder %s2381_s7, %s1982_s29 }
  0xa3   : > { %p1979_p3 = pnand %p1977_p8, %p1963_p1  ;;  %p1985_p12 = scmp.lt.s32.totalorder %s1983_s5, %s1976_s18 }
  0xa5   : > { %p1980_p9 = pneg %p1979_p3  ;;  %p1986_p6 = por %p1985_p12, %p1984_p4 }
  0xa7   : > { %p1987_p13 = pnand %p1986_p6, %p1980_p9 }
  0xa9   : > { %1990 = shalt.err (!%p1987_p13)
}
  0xaa   : > { %1752 = dma.hbm_to_vmem [thread:$0]  (!%p2377_p10), %s2372_s9, 128, %s2381_s7, %s276_s2  }
  0xab   : > { %s294_s3 = sand.u32 1, %s2119_s26   ;;  %s298_s4 = scalar_lea.vmem [#allocation8], %s2367_s20 }
  0xac   : > { %s305_s17 = sshll.u32 %s298_s4, 4  ;;  %s295_s30 = scalar_lea.sflag [#allocation9], %s294_s3  ;;  %s306_s17 = int_to_ptr.vmem [resolvable:$true] %s305_s17 }
  0xad   : > { %s1991_s14 = scalar_lea.hbm %s2386_s11, 128  ;;  %s1996_s19 = scalar_lea.hbm %s2599_s1, 256 }
  0xae   : > { %p1992_p4 = scmp.ne.s32.totalorder %s2386_s11, %s1991_s14  ;;  %p1997_p0 = scmp.lt.u32.totalorder %s2386_s11, %s2599_s1 }
  0xaf   : > { %p1998_p7 = scmp.lt.u32.totalorder %s1996_s19, %s1991_s14  ;;  %p2000_p8 = scmp.lt.u32.totalorder %s1991_s14, %s2386_s11 }
  0xb0   : > { %p1994_p9 = pnand %p1992_p4, %p1963_p1 }
  0xb1   : > { %p1999_p5 = por %p1998_p7, %p1997_p0 }
  0xb2   : > { %p1995_p11 = pneg %p1994_p9 }
  0xb3   : > { %p2001_p3 = por %p2000_p8, %p1999_p5 }
  0xb5   : > { %p2002_p12 = pnand %p2001_p3, %p1995_p11 }
  0xb7   : > { %2005 = shalt.err (!%p2002_p12)
}
  0xb8   : > { %s2006_s2 = scalar_lea.vmem %s306_s17, 128  ;;  %s2128_s20 = smov [#allocation8]  }
  0xb9   : > { %p2007_p6 = scmp.ne.s32.totalorder %s306_s17, %s2006_s2  ;;  %s2011_s9 = sshll.u32 %s2128_s20, 4  ;;  %s2012_s9 = int_to_ptr.vmem [resolvable:$false] %s2011_s9 }
  0xba   : > { %s2013_s7 = scalar_lea.vmem %s2012_s9, 256  ;;  %p2014_p9 = scmp.lt.s32.totalorder %s306_s17, %s2012_s9 }
  0xbb   : > { %p2009_p13 = pnand %p2007_p6, %p1963_p1  ;;  %p2015_p2 = scmp.lt.s32.totalorder %s2013_s7, %s2006_s2 }
  0xbd   : > { %p2010_p4 = pneg %p2009_p13  ;;  %p2016_p0 = por %p2015_p2, %p2014_p9 }
  0xbf   : > { %p2017_p7 = pnand %p2016_p0, %p2010_p4 }
  0xc1   : > { %2020 = shalt.err (!%p2017_p7)
}
  0xc2   : > { %1755 = dma.hbm_to_vmem [thread:$0]  (!%p2377_p10), %s2386_s11, 128, %s306_s17, %s295_s30  }
  0xc3   : > { %p2628_p11 = scmp.ne.s32.totalorder %s2614_s28, 0 }
  0xc4   : > { %s2437_s3 = sand.u32 (!%p2628_p11), 1, %s2103_s22   ;;  %p2629_p2 = scmp.ne.s32.totalorder (!%p2628_p11), %s2624_s8, 0 }
  0xc5   : > { %314 = sbr.rel (%p2628_p11) target bundleno = 1767 (0x6e7), region = 44  ;;  %s2440_s4 = sshll.u32 (!%p2628_p11), %s2437_s3, 3 }
  0xc6   : > { %s317_s14 = scalar_lea.sflag (!%p2628_p11), [#allocation6], %s2437_s3  ;;  %s320_s10 = scalar_lea.vmem (!%p2628_p11), [#allocation5], %s2440_s4 }
  0xcc   : > { %2074 = dma.done.wait (%p2629_p2), %s317_s14, 128  }
  0xcd   : > { %2076 = vsyncadd (%p2629_p2), %s317_s14, 4294967168  ;;  %s325_s28 = sand.u32 1, %s2205_s27   ;;  %s329_s11 = scalar_lea.vmem [#allocation8], %s2440_s4 }
  0xce   : > { %s326_s12 = scalar_lea.sflag [#allocation9], %s325_s28 }
  0xcf   : > { %2078 = dma.done.wait (%p2629_p2), %s326_s12, 128  }
  0xd0   : > { %2080 = vsyncadd (%p2629_p2), %s326_s12, 4294967168  ;;  %p2630_p10 = scmp.eq.s32.totalorder %s2205_s27, 0 }
  0xd2   : > { %2082 = dma.done.wait (%p2630_p10), [#allocation9], 512   ;;  %p2631_p1 = pmov %p2630_p10 }
  0xd4   : > { %2084 = vsyncadd (%p2631_p1), [#allocation9], 4294966784  ;;  %p2632_p5 = pmov %p2631_p1 }
  0xd5   : > { %p2633_p8 = pmov %p2631_p1 }
  0xd6   : > { %2086 = dma.done.wait (%p2632_p5), [#allocation12], 1024  }
  0xd7   : > { %2088 = vsyncadd (%p2633_p8), [#allocation12], 4294966272  ;;  %p2634_p3 = pmov %p2631_p1 }
  0xd8   : > { %p2635_p12 = pmov %p2631_p1 }
  0xd9   : > { %2090 = dma.done.wait (%p2634_p3), [#allocation15], 512  }
  0xda   : > { %2092 = vsyncadd (%p2635_p12), [#allocation15], 4294966784  ;;  %v2129_v0 = vmov 0.0|0.0   ;;  %vm2130_vm0 = vmmov 0   ;;  %v2131_v1 = vmov 0.0   ;;  %v384_v2 = vld [vmem:[#allocation11] sm:$0xff] }
  0xdb   : > { %1690 = vmatprep.subr.bf16.mxu0 %v2129_v0  ;;  %1614 = vmatprep.mubr.msk.f32.mxu0 %vm2130_vm0, %v2131_v1  ;;  %v385_v3 = vld [vmem:[#allocation11 + $0x8] sm:$0xff]  ;;  %v386_v4 = vld [vmem:[#allocation11 + $0x10] sm:$0xff]  ;;  %v387_v6 = vld [vmem:[#allocation11 + $0x18] sm:$0xff]  ;;  %vm388_vm1 = vcmask 261120   ;;  %vm619_vm2 = vcmask 64512   ;;  %s2132_s27 = smov 120  }
  0xdc   : > { %1696 = vmatprep.subr.bf16.mxu1 %v2129_v0  ;;  %1625 = vmatprep.mubr.msk.f32.mxu1 %vm2130_vm0, %v2131_v1  ;;  %v1691_v5 = vpack.c.bf16 %v385_v3, %v384_v2  ;;  %v1694_v7 = vpack.c.bf16 %v387_v6, %v386_v4  ;;  %v463_v8 = vld [vmem:[#allocation13] sm:$0xff]  ;;  %v464_v9 = vld [vmem:[#allocation13 + $0x8] sm:$0xff]  ;;  %v383_v13 = vld [vmem:[%s329_s11] sm:$0xff]  ;;  %s2133_s8 = smov 112   ;;  %s2134_s17 = smov 104   ;;  %vm951_vm3 = vcmask 130112  }
  0xdd   : > { %v539_v10 = vld [vmem:[#allocation10] sm:$0xff]  ;;  %v540_v11 = vld [vmem:[#allocation10 + $0x8] sm:$0xff]  ;;  %v1697_v12 = vpack.c.bf16 %v464_v9, %v463_v8  ;;  %v541_v15 = vld [vmem:[#allocation10 + $0x10] sm:$0xff]  ;;  %s2135_s30 = smov 8   ;;  %s2136_s18 = smov 16   ;;  %vm1122_vm4 = vcmask 195712  }
  0xde   : > { %1692 = vmatpush3.bf16.msra.mxu0 %v1691_v5  ;;  %v1703_v14 = vpack.c.bf16 %v540_v11, %v539_v10  ;;  %v542_v16 = vld [vmem:[#allocation10 + $0x18] sm:$0xff]  ;;  %v538_v18 = vld [vmem:[%s320_s10] sm:$0xff]  ;;  %v465_v19 = vld [vmem:[#allocation13 + $0x10] sm:$0xff]  ;;  %s2137_s19 = smov 24   ;;  %vm1293_vm5 = vcmask 261312   ;;  %s1567_s29 = sshll.u32 %s2111_s24, 7 }
  0xdf   : > { %1693 = vmatprep.subr.bf16.mxu0 %v2129_v0  ;;  %1698 = vmatpush3.bf16.msra.mxu1 %v1697_v12  ;;  %v1706_v17 = vpack.c.bf16 %v542_v16, %v541_v15  ;;  %v466_v20 = vld [vmem:[#allocation13 + $0x18] sm:$0xff]  ;;  %s378_s5 = scalar_lea.vmem [#allocation16], %s2440_s4  ;;  %s2548_s7 = scalar_lea.hbm %s2604_s6, %s1567_s29 }
  0xe0   : > { %1699 = vmatprep.subr.bf16.mxu1 %v2129_v0  ;;  %v1700_v21 = vpack.c.bf16 %v466_v20, %v465_v19  ;;  %v1298_v19 = vld [vmem:[#allocation14 + $0x10] sm:$0xff]  ;;  %v1299_v20 = vld [vmem:[#allocation14 + $0x18] sm:$0xff]  ;;  %s1389_s2 = sshll.u32 %s378_s5, 4  ;;  %s1375_s14 = scalar_lea.sflag [#allocation7], %s2437_s3  ;;  %s2550_s2 = int_to_ptr.vmem [resolvable:$true] %s1389_s2 }
  0xe1   : > { %s2021_s10 = scalar_lea.vmem %s2550_s2, 128  ;;  %p2636_p13 = scmp.ne.s32.totalorder %s2625_s13, 0 }
  0xe2   : > { %1695 = vmatpush3.bf16.msra.mxu0 %v1694_v7  ;;  %p2022_p6 = scmp.ne.s32.totalorder %s2550_s2, %s2021_s10  ;;  %s2138_s24 = smov [#allocation16]  }
  0xe3   : > { %1702 = vmatprep.subr.bf16.mxu0 %v2129_v0  ;;  %1701 = vmatpush3.bf16.msra.mxu1 %v1700_v21  ;;  %s2025_s4 = sshll.u32 %s2138_s24, 4  ;;  %s2026_s4 = int_to_ptr.vmem [resolvable:$false] %s2025_s4 }
  0xe4   : > { %1639 = vmatprep.subr.mxu1 %v2131_v1  ;;  %p2023_p4 = pnand %p2022_p6, %p2636_p13  ;;  %s2027_s28 = scalar_lea.vmem %s2026_s4, 256 }
  0xe5   : > { %1615 = vmatmul.mubr.msk.f32.vlgmr.msra.gmra.mrb[0].mxu0 %vm388_vm1, %v383_v13  ;;  %p2028_p0 = scmp.lt.s32.totalorder %s2550_s2, %s2026_s4  ;;  %p2029_p7 = scmp.lt.s32.totalorder %s2027_s28, %s2021_s10 }
  0xe6   : > { %1704 = vmatpush3.bf16.msra.mxu0 %v1703_v14  ;;  %1636 = vmatprep.mubr.msk.f32.mxu0 %vm2130_vm0, %v2131_v1  ;;  %p2024_p9 = pneg %p2023_p4 }
  0xe7   : > { %1705 = vmatprep.subr.bf16.mxu0 %v2129_v0  ;;  %1626 = vmatmul.mubr.msk.f32.vlgmr.msra.gmra.mrb[0].mxu1 %vm388_vm1, %v383_v13  ;;  %p2030_p11 = por %p2029_p7, %p2028_p0 }
  0xe8   : > { %1641 = vmatprep.mubr.msk.f32.mxu1 %vm2130_vm0, %v2131_v1 }
  0xe9   : > { %p2031_p2 = pnand %p2030_p11, %p2024_p9 }
  0xea   : > { %1707 = vmatpush3.bf16.msra.mxu0 %v1706_v17  ;;  %v1296_v17 = vld [vmem:[#allocation14] sm:$0xff] }
  0xeb   : > { %1659 = vmatprep.subr.mxu0 %v2131_v1 }
  0xed   : > { %1637 = vmatmul.mubr.msk.f32.vlgmr.msra.gmra.mrb[2].mxu0 %vm388_vm1, %v538_v18  ;;  %v1297_v18 = vld [vmem:[#allocation14 + $0x8] sm:$0xff] }
  0xee   : > { %1661 = vmatprep.mubr.msk.f32.mxu0 %vm2130_vm0, %v2131_v1 }
 0x1b8   : > { %v458_v22 = vpop.f32.mrb[0].mxu0 }
 0x1b9   : > { %462 = vst.msk [vmem:[#allocation2] sm:$0xff] %vm388_vm1, %v458_v22  ;;  %v1616_v23 = vpop.f32.mrb[1].mxu0 }
 0x1ba   : > { %v533_v27 = vpop.f32.mrb[0].mxu1  ;;  %v1712_v23 = vpack.c.bf16 %v1299_v20, %v1298_v19 }
 0x1bb   : > { %537 = vst.msk [vmem:[#allocation3] sm:$0xff] %vm388_vm1, %v533_v27  ;;  %v1627_v28 = vpop.f32.mrb[1].mxu1 }
 0x1c0   : > { %v613_v24 = vpop.f32.mrb[2].mxu0  ;;  %v617_v25 = vld [vmem:[#allocation2] sm:$0xff] }
 0x1c1   : > { %1640 = vmatpush3.xpose.msk.msra.mxu1 %vm619_vm2, %v617_v25  ;;  %781 = vrot.lane.b32.xlu1 %v613_v24, %s2132_s27  ;;  %v1638_v26 = vpop.f32.mrb[3].mxu0 }
 0x1c2   : > { %1644 = vmatprep.subr.mxu1 %v2131_v1  ;;  %v618_v29 = vld [vmem:[#allocation3] sm:$0xff] }
 0x1c4   : > { %1642 = vmatmul.mubr.msk.f32.vlgmr.msra.gmra.mrb[2].mxu1 %vm619_vm2, %v613_v24 }
 0x1c5   : > { %955 = vrot.lane.b32.xlu1 %v617_v25, %s2133_s8  ;;  %1646 = vmatprep.mubr.msk.f32.mxu1 %vm2130_vm0, %v2131_v1 }
 0x1c6   : > { %1645 = vmatpush3.msra.mxu1 %v618_v29 }
 0x1c7   : > { %1649 = vmatprep.subr.mxu1 %v2131_v1 }
 0x1c9   : > { %953 = vrot.lane.b32.xlu1 %v613_v24, %s2133_s8 }
 0x1cd   : > { %1126 = vrot.lane.b32.xlu1 %v617_v25, %s2134_s17 }
 0x1d1   : > { %1124 = vrot.lane.b32.xlu1 %v613_v24, %s2134_s17 }
 0x1d5   : > { %1040 = vrot.lane.b32.xlu1 %v618_v29, %s2133_s8 }
 0x233   : > { %v782_v30 = vpop.permute.xlu1 %781 }
 0x237   : > { %v956_v31 = vpop.permute.xlu1 %955 }
 0x238   : > { %1660 = vmatpush3.xpose.msk.msra.mxu0 %vm619_vm2, %v956_v31 }
 0x239   : > { %1669 = vmatprep.subr.mxu0 %v2131_v1 }
 0x23b   : > { %v954_v32 = vpop.permute.xlu1 %953 }
 0x23c   : > { %1662 = vmatmul.mubr.msk.f32.vlgmr.msra.gmra.mrb[4].mxu0 %vm619_vm2, %v954_v32 }
 0x23d   : > { %1671 = vmatprep.mubr.msk.f32.mxu0 %vm2130_vm0, %v2131_v1 }
 0x23f   : > { %v1127_v33 = vpop.permute.xlu1 %1126 }
 0x240   : > { %1670 = vmatpush3.xpose.msk.msra.mxu0 %vm619_vm2, %v1127_v33 }
 0x241   : > { %1708 = vmatprep.subr.bf16.mxu0 %v2129_v0 }
 0x243   : > { %v1125_v34 = vpop.permute.xlu1 %1124 }
 0x244   : > { %1672 = vmatmul.mubr.msk.f32.vlgmr.msra.gmra.mrb[6].mxu0 %vm619_vm2, %v1125_v34 }
 0x245   : > { %1687 = vmatprep.mubr.msk.f32.mxu0 %vm2130_vm0, %v2131_v1 }
 0x247   : > { %v1041_v60 = vpop.permute.xlu1 %1040 }
 0x297   : > { %v692_v35 = vpop.f32.mrb[2].mxu1 }
 0x298   : > { %v1643_v36 = vpop.f32.mrb[3].mxu1  ;;  %v696_v37 = vsel %vm619_vm2, %v692_v35, -inf }
 0x299   : > { %697 = vmax.xlane.f32.xlu0 %v696_v37 }
 0x2af   : > { %783 = vrot.lane.b32.xlu0 %v617_v25, %s2132_s27 }
 0x30f   : > { %v1027_v38 = vpop.f32.mrb[4].mxu0 }
 0x310   : > { %v1663_v39 = vpop.f32.mrb[5].mxu0  ;;  %v1031_v40 = vsel %vm619_vm2, %v1027_v38, -inf }
 0x311   : > { %1032 = vmax.xlane.f32.xlu0 %v1031_v40 }
 0x317   : > { %v1198_v41 = vpop.f32.mrb[6].mxu0 }
 0x318   : > { %v1673_v42 = vpop.f32.mrb[7].mxu0  ;;  %v1202_v43 = vsel %vm619_vm2, %v1198_v41, -inf }
 0x319   : > { %1203 = vmax.xlane.f32.xlu1 %v1202_v43 }
 0x326   : > { %v698_v44 = vpop.xlane.xlu0 %697 }
 0x327   : > { %v699_v45 = vsub.f32 %v692_v35, %v698_v44  ;;  %869 = vrot.lane.b32.xlu0 %v618_v29, %s2132_s27 }
 0x329   : > { %v700_v46 = vmul.f32 1.442695, %v699_v45 }
 0x32a   : > { %v784_v48 = vpop.permute.xlu0 %783 }
 0x32b   : > { %1833 = vpow2.f32 %v700_v46 }
 0x335   : > { %v1834_v47 = vpop.eup %1833 }
 0x336   : > { %1647 = vmatmul.mubr.msk.f32.vlgmr.msra.gmra.mrb[4].mxu1 %vm619_vm2, %v1834_v47  ;;  %v702_v10 = vsel %vm619_vm2, %v1834_v47, 0.0 }
 0x337   : > { %1650 = vmatpush3.xpose.msk.msra.mxu1 %vm619_vm2, %v784_v48  ;;  %1651 = vmatprep.mubr.msk.f32.mxu1 %vm2130_vm0, %v2131_v1 }
 0x338   : > { %1654 = vmatprep.subr.mxu1 %v2131_v1 }
 0x33a   : > { %1652 = vmatmul.mubr.msk.f32.vlgmr.msra.gmra.mrb[6].mxu1 %vm619_vm2, %v782_v30 }
 0x33b   : > { %1656 = vmatprep.mubr.msk.f32.mxu1 %vm2130_vm0, %v2131_v1 }
 0x39e   : > { %v1033_v49 = vpop.xlane.xlu0 %1032 }
 0x39f   : > { %v1034_v50 = vsub.f32 %v1027_v38, %v1033_v49 }
 0x3a1   : > { %v1035_v57 = vmul.f32 1.442695, %v1034_v50 }
 0x3a2   : > { %v870_v51 = vpop.permute.xlu0 %869 }
 0x3a3   : > { %1655 = vmatpush3.msra.mxu1 %v870_v51  ;;  %1835 = vpow2.f32 %v1035_v57 }
 0x3a4   : > { %1664 = vmatprep.subr.mxu1 %v2131_v1 }
 0x3a6   : > { %v1204_v61 = vpop.xlane.xlu1 %1203 }
 0x3a7   : > { %v1205_v62 = vsub.f32 %v1198_v41, %v1204_v61 }
 0x3a9   : > { %v1206_v3 = vmul.f32 1.442695, %v1205_v62 }
 0x3ad   : > { %v1836_v58 = vpop.eup %1835 }
 0x3ae   : > { %v1037_v59 = vsel %vm619_vm2, %v1836_v58, 0.0 }
 0x409   : > { %v774_v52 = vpop.f32.mrb[4].mxu1 }
 0x40a   : > { %v1648_v53 = vpop.f32.mrb[5].mxu1 }
 0x40d   : > { %v855_v54 = vpop.f32.mrb[6].mxu1 }
 0x40e   : > { %v1653_v55 = vpop.f32.mrb[7].mxu1  ;;  %v859_v56 = vsel %vm619_vm2, %v855_v54, -inf }
 0x40f   : > { %860 = vmax.xlane.f32.xlu1 %v859_v56 }
 0x420   : > { %1211 = vrot.lane.b32.xlu1 %v618_v29, %s2134_s17 }
 0x444   : > { %1038 = vadd.xlane.f32.xlu1 %v1037_v59 }
 0x49c   : > { %v861_v63 = vpop.xlane.xlu1 %860 }
 0x49d   : > { %v862_v2 = vsub.f32 %v855_v54, %v861_v63 }
 0x49f   : > { %v863_v4 = vmul.f32 1.442695, %v862_v2 }
 0x4a0   : > { %v1212_v8 = vpop.permute.xlu1 %1211 }
 0x4a1   : > { %1837 = vpow2.f32 %v863_v4 }
 0x4a2   : > { %1839 = vpow2.f32 %v1206_v3 }
 0x4ab   : > { %v1838_v5 = vpop.eup %1837 }
 0x4ac   : > { %1657 = vmatmul.mubr.msk.f32.vlgmr.msra.gmra.mrb[8].mxu1 %vm619_vm2, %v1838_v5  ;;  %v865_v6 = vsel %vm619_vm2, %v1838_v5, 0.0  ;;  %v1840_v7 = vpop.eup %1839 }
 0x4ad   : > { %1665 = vmatpush3.msra.mxu1 %v1041_v60  ;;  %866 = vadd.xlane.f32.xlu0 %v865_v6  ;;  %v1208_v9 = vsel %vm619_vm2, %v1840_v7, 0.0 }
 0x4ae   : > { %1666 = vmatprep.mubr.msk.f32.mxu1 %vm2130_vm0, %v2131_v1  ;;  %1674 = vmatprep.subr.mxu1 %v2131_v1 }
 0x4b0   : > { %1667 = vmatmul.mubr.msk.f32.vlgmr.msra.gmra.mrb[10].mxu1 %vm619_vm2, %v1836_v58 }
 0x4b1   : > { %1675 = vmatpush3.msra.mxu1 %v1212_v8  ;;  %1209 = vadd.xlane.f32.xlu0 %v1208_v9 }
 0x4b2   : > { %1676 = vmatprep.mubr.msk.f32.mxu1 %vm2130_vm0, %v2131_v1  ;;  %v1709_v1 = vpack.c.bf16 %v1297_v18, %v1296_v17 }
 0x4b4   : > { %1677 = vmatmul.mubr.msk.f32.vlgmr.msra.gmra.mrb[12].mxu1 %vm619_vm2, %v1840_v7  ;;  %1710 = vmatpush3.bf16.msra.mxu0 %v1709_v1 }
 0x4b5   : > { %703 = vadd.xlane.f32.xlu0 %v702_v10  ;;  %1711 = vmatprep.subr.bf16.mxu0 %v2129_v0 }
 0x4b8   : > { %1713 = vmatpush3.bf16.msra.mxu0 %v1712_v23 }
 0x4d1   : > { %v1039_v16 = vpop.xlane.xlu1 %1038 }
 0x53a   : > { %v867_v11 = vpop.xlane.xlu0 %866 }
 0x53e   : > { %v1210_v12 = vpop.xlane.xlu0 %1209 }
 0x542   : > { %v704_v13 = vpop.xlane.xlu0 %703 }
 0x543   : > { %1841 = vrcp.f32 %v704_v13 }
 0x544   : > { %1843 = vrcp.f32 %v867_v11 }
 0x545   : > { %1845 = vrcp.f32 %v1039_v16 }
 0x546   : > { %1847 = vrcp.f32 %v1210_v12 }
 0x54d   : > { %v1842_v14 = vpop.eup %1841 }
 0x54e   : > { %v779_v15 = vmul.f32 %v1842_v14, %v774_v52  ;;  %v1844_v21 = vpop.eup %1843 }
 0x54f   : > { %v1846_v26 = vpop.eup %1845 }
 0x550   : > { %780 = vst.msk [vmem:[#allocation4] sm:$0xff] %vm619_vm2, %v779_v15  ;;  %v1848_v30 = vpop.eup %1847 }
 0x57f   : > { %v941_v22 = vpop.f32.mrb[8].mxu1 }
 0x580   : > { %v946_v24 = vmul.f32 %v1844_v21, %v941_v22  ;;  %v1658_v25 = vpop.f32.mrb[9].mxu1 }
 0x582   : > { %948 = vrot.lane.b32.xlu1 %v946_v24, %s2135_s30 }
 0x583   : > { %v1112_v27 = vpop.f32.mrb[10].mxu1 }
 0x584   : > { %v1117_v28 = vmul.f32 %v1846_v26, %v1112_v27  ;;  %v1668_v29 = vpop.f32.mrb[11].mxu1 }
 0x586   : > { %1119 = vrot.lane.b32.xlu0 %v1117_v28, %s2136_s18 }
 0x587   : > { %v1283_v31 = vpop.f32.mrb[12].mxu1 }
 0x588   : > { %v1288_v32 = vmul.f32 %v1848_v30, %v1283_v31  ;;  %v1678_v33 = vpop.f32.mrb[13].mxu1 }
 0x58a   : > { %1290 = vrot.lane.b32.xlu1 %v1288_v32, %s2137_s19 }
 0x5f4   : > { %v949_v34 = vpop.permute.xlu1 %948 }
 0x5f5   : > { %952 = vst.msk [vmem:[#allocation4] sm:$0xff] %vm951_vm3, %v949_v34 }
 0x5f8   : > { %v1120_v0 = vpop.permute.xlu0 %1119 }
 0x5f9   : > { %1123 = vst.msk [vmem:[#allocation4] sm:$0xff] %vm1122_vm4, %v1120_v0 }
 0x5fc   : > { %v1291_v35 = vpop.permute.xlu1 %1290 }
 0x5fd   : > { %1294 = vst.msk [vmem:[#allocation4] sm:$0xff] %vm1293_vm5, %v1291_v35 }
 0x604   : > { %v1295_v36 = vld [vmem:[#allocation4] sm:$0xff] }
 0x605   : > { %1688 = vmatmul.mubr.msk.f32.vlgmr.msra.gmra.mrb[8].mxu0 %vm388_vm1, %v1295_v36 }
 0x6d8   : > { %v1369_v37 = vpop.f32.mrb[8].mxu0 }
 0x6d9   : > { %1373 = vst.msk [vmem:[%s378_s5] sm:$0xff] %vm388_vm1, %v1369_v37  ;;  %v1689_v38 = vpop.f32.mrb[9].mxu0 }
 0x6da   : > { %2034 = shalt.err (!%p2031_p2)
}
 0x6db   : > { %s2035_s3 = scalar_lea.hbm %s2548_s7, 128  ;;  %s2039_s27 = scalar_lea.hbm %s2604_s6, 256 }
 0x6dc   : > { %p2036_p10 = scmp.ne.s32.totalorder %s2548_s7, %s2035_s3  ;;  %p2040_p8 = scmp.lt.u32.totalorder %s2548_s7, %s2604_s6 }
 0x6dd   : > { %p2041_p3 = scmp.lt.u32.totalorder %s2039_s27, %s2035_s3  ;;  %p2043_p6 = scmp.lt.u32.totalorder %s2035_s3, %s2548_s7 }
 0x6de   : > { %p2037_p1 = pnand %p2036_p10, %p2636_p13 }
 0x6df   : > { %p2042_p12 = por %p2041_p3, %p2040_p8 }
 0x6e0   : > { %p2038_p5 = pneg %p2037_p1 }
 0x6e1   : > { %p2044_p4 = por %p2043_p6, %p2042_p12 }
 0x6e3   : > { %p2045_p9 = pnand %p2044_p4, %p2038_p5 }
 0x6e5   : > { %2048 = shalt.err (!%p2045_p9)
}
 0x6e6   : > { %1734 = dma.vmem_to_hbm [thread:$0]  (%p2636_p13), %s2550_s2, 128, %s2548_s7, %s1375_s14  }
 0x6e7 PF: > { %s1401_s30 = sand.u32 1, %s2099_s21   ;;  %p2637_p0 = scmp.ne.s32.totalorder %s2626_s16, 0 }
 0x6e8   : > { %p2638_p7 = scmp.ge.s32.totalorder %s2119_s26, 2  ;;  %s1402_s18 = scalar_lea.sflag [#allocation7], %s1401_s30 }
 0x6ea   : > { %p1757_p11 = pnand %p2638_p7, %p2637_p0 }
 0x6ec   : > { %2094 = dma.done.wait (!%p1757_p11), %s1402_s18, 128  }
 0x6ed   : > { %2096 = vsyncadd (!%p1757_p11), %s1402_s18, 4294967168  ;;  %s27_s26 = sadd.s32 1, %s2119_s26   ;;  %s2639_s13 = sld [smem:[#allocation23_spill]] }
 0x6ee   : > { %p24_p2 = scmp.ge.s32.totalorder %s27_s26, 4   ;;  %s2640_s21 = smov %s2103_s22 }
 0x6ef   : > { %s2641_s22 = smov %s2107_s23  ;;  %s2642_s23 = smov %s2358_s15 }
 0x6f0   : > { %s2643_s24 = smov %s2115_s25  ;;  %26 = sbr.rel (!%p24_p2) target bundleno = 15 (0xf), region = 122 }
 0x6f3   : > { %s2644_s25 = smov %s2639_s13 }
 0x6f7   :  { %1407 = vsyncpa [#allocation6], 1 }
 0x6f8   :  { %1409 = vsyncpa [#allocation6 + $0x1], 1 }
 0x6f9   :  { %1410 = vsyncpa [#allocation9], 1 }
 0x6fa   :  { %1412 = vsyncpa [#allocation9 + $0x1], 1 }
 0x6fb   :  { %1413 = vsyncpa [#allocation12], 1 }
 0x6fc   :  { %1414 = vsyncpa [#allocation15], 1 }
 0x6fd   :  { %1415 = vsyncpa [#allocation7], 1 }
 0x6fe   :  { %1417 = vsyncpa [#allocation7 + $0x1], 1 }

</bundles_post_ra>
